<compile_context>
chip_gen: v7x
topology: tpu7x:2x2x1
jax: 0.10.0
libtpu: 0.0.40
codegen_flags: <defaults>
</compile_context>

<pallas_src>
import functools

import jax
import jax.numpy as jnp
from jax.experimental import pallas as pl
from jax.experimental.pallas import tpu as pltpu


def _near_neighbor_kernel(cp_ref, pos_ref, out_ref, *, radius, n_neighbor):
    cp = cp_ref[0]           # (TS, C) f32 — centroid coords for this S-tile
    pts = pos_ref[0]         # (C, N)  f32 — all point coords, C-major (lane-dense N)
    TS, C = cp.shape
    N = pts.shape[1]
    K = n_neighbor

    # Squared pairwise distances (TS, N), elementwise on the VPU:
    # (TS,1) lane-broadcast minus (1,N) sublane-broadcast per coordinate.
    d = None
    for c in range(C):
        diff = cp[:, c:c + 1] - pts[c:c + 1, :]        # (TS, N)
        sq = diff * diff
        d = sq if d is None else d + sq

    # Single resident selection array: in-radius points keep their index,
    # out-of-radius points get sentinel N.  (Collapses mask + iota + distance
    # into one (TS, N) operand for the K-loop.)
    iota_n = jax.lax.broadcasted_iota(jnp.int32, (TS, N), 1)
    cand0 = jnp.where(d <= (radius * radius), iota_n, N)   # (TS, N) int32
    iota_k = jax.lax.broadcasted_iota(jnp.int32, (TS, K), 1)

    # Slot 0: smallest in-radius index (or sentinel N). This is also
    # `group_first`, used to backfill later sentinel slots.
    first = jnp.min(cand0, axis=-1, keepdims=True)          # (TS, 1) int32
    out0 = jnp.where(iota_k == 0, first, 0)                 # (TS, K)

    def body(k, carry):
        prev, out = carry                                    # prev: pre-backfill idx of slot k-1
        # where feeds min directly → fuses into the lane reduction (no per-k
        # (TS, N) store stream).
        idx_k = jnp.min(jnp.where(cand0 > prev, cand0, N),
                        axis=-1, keepdims=True)              # (TS, 1)
        col = jnp.where(idx_k == N, first, idx_k)            # backfill sentinel with first
        out = jnp.where(iota_k == k, col, out)               # place in column k
        return idx_k, out

    unroll = True if K <= 16 else 8
    _, out = jax.lax.fori_loop(1, K, body, (first, out0), unroll=unroll)
    out_ref[0] = out


def _pick_s_tile(B, S, N, C, K):
    """S-tile size bounded by a cross-generation VMEM intermediate budget."""
    # ~3 resident (TS, N) 4-byte intermediates (d, cand0, one fused temp).
    per_row_bytes = 3 * N * 4 + 2 * (C + K) * 4
    budget = 24 * 1024 * 1024          # fits v7x (64 MiB/TC) with headroom
    ts = max(8, min(512, budget // per_row_bytes))
    if ts >= S:
        ts = S
    else:
        ts = max(8, (ts // 8) * 8)     # (8,128) sublane constraint
    # v7x has 2 TensorCores per chip: when B == 1, make the S axis >= 2 steps.
    if B == 1 and ts >= S and S >= 16:
        ts = ((S + 1) // 2 + 7) // 8 * 8
    return ts


def grid_gcn_near_neighbors(pos, centroids, radius, n_neighbor,
                            centroids_index=None, index_voxels=None):
    """Pallas implementation of GridGCNNearNeighbors.forward.

    pos: (B, N, 3) f32, centroids: (B, S) int32. Returns (B, S, K) int32.
    centroids_index / index_voxels are unused by the reference forward pass.
    """
    B, N, C = pos.shape
    S = centroids.shape[1]
    K = int(n_neighbor)

    # index_points(pos, centroids) gather + C-major transpose: plain-JAX glue.
    center_pos = jax.vmap(lambda p, c: p[c])(pos, centroids)   # (B, S, C)
    pos_t = jnp.transpose(pos, (0, 2, 1))                      # (B, C, N)

    TS = _pick_s_tile(B, S, N, C, K)
    grid = (B, pl.cdiv(S, TS))

    kernel = functools.partial(_near_neighbor_kernel,
                               radius=float(radius), n_neighbor=K)
    return pl.pallas_call(
        kernel,
        out_shape=jax.ShapeDtypeStruct((B, S, K), jnp.int32),
        grid=grid,
        in_specs=[
            pl.BlockSpec((1, TS, C), lambda b, s: (b, s, 0)),
            # Constant in s → the (C, N) slab is DMA'd once per batch, not per S-tile.
            pl.BlockSpec((1, C, N), lambda b, s: (b, 0, 0)),
        ],
        out_specs=pl.BlockSpec((1, TS, K), lambda b, s: (b, s, 0)),
        compiler_params=pltpu.CompilerParams(
            dimension_semantics=("parallel", "parallel"),
            vmem_limit_bytes=48 * 1024 * 1024),
    )(center_pos, pos_t)


def _reference(pos, centroids, radius, n_neighbor):
    """Pure-JAX transcription of the PyTorch forward (sort-based)."""
    B, N, C = pos.shape
    cp = jax.vmap(lambda p, c: p[c])(pos, centroids)            # (B, S, C)
    diff = cp[:, :, None, :] - pos[:, None, :, :]               # (B, S, N, C)
    d = None
    for c in range(C):                                          # same add order as kernel
        sq = diff[..., c] ** 2
        d = sq if d is None else d + sq
    gi = jnp.broadcast_to(jnp.arange(N, dtype=jnp.int32), d.shape)
    gi = jnp.where(d > radius ** 2, N, gi)
    gi = jnp.sort(gi, axis=-1)[:, :, :n_neighbor]
    first = gi[:, :, :1]
    return jnp.where(gi == N, first, gi)


if __name__ == "__main__":
    B, N, S, K = 2, 64, 8, 8
    radius = 0.3

    key = jax.random.PRNGKey(0)
    k_pos, k_cent = jax.random.split(key)
    pos = jax.random.uniform(k_pos, (B, N, 3), dtype=jnp.float32)
    centroids = jax.random.randint(k_cent, (B, S), 0, N, dtype=jnp.int32)

    out = grid_gcn_near_neighbors(pos, centroids, radius, K)
    out = jax.block_until_ready(out)

    ref = _reference(pos, centroids, radius, K)
    assert out.shape == (B, S, K), out.shape
    assert bool(jnp.all(out == ref)), "mismatch vs reference"
    print("KERNEL_OK")
</pallas_src>

<mosaic_0001>
module attributes {stable_mosaic.version = 11 : i64} {
  func.func @_near_neighbor_kernel(%arg0: i32, %arg1: i32, %arg2: memref<1x8x3xf32, #tpu.memory_space<vmem>>, %arg3: memref<1x3x64xf32, #tpu.memory_space<vmem>>, %arg4: memref<1x8x8xi32, #tpu.memory_space<vmem>>) attributes {dimension_semantics = [#tpu.dimension_semantics<parallel>, #tpu.dimension_semantics<parallel>], iteration_bounds = array<i64: 2, 1>, scalar_prefetch = 0 : i64, scratch_operands = 0 : i64, tpu.core_type = #tpu.core_type<tc>, window_params = [{transform_indices = @transform_0, window_bounds = array<i64: 1, 8, 3>}, {transform_indices = @transform_1, window_bounds = array<i64: 1, 3, 64>}, {transform_indices = @transform_2, window_bounds = array<i64: 1, 8, 8>}]} {
    %c0 = arith.constant 0 : index
    %c0_0 = arith.constant 0 : index
    %c0_1 = arith.constant 0 : index
    %0 = vector.load %arg2[%c0, %c0_0, %c0_1] : memref<1x8x3xf32, #tpu.memory_space<vmem>>, vector<1x8x3xf32>
    %1 = vector.shape_cast %0 : vector<1x8x3xf32> to vector<8x3xf32>
    %c0_2 = arith.constant 0 : index
    %c0_3 = arith.constant 0 : index
    %c0_4 = arith.constant 0 : index
    %2 = vector.load %arg3[%c0_2, %c0_3, %c0_4] : memref<1x3x64xf32, #tpu.memory_space<vmem>>, vector<1x3x64xf32>
    %3 = vector.shape_cast %2 : vector<1x3x64xf32> to vector<3x64xf32>
    %4 = vector.extract_strided_slice %1 {offsets = [0, 0], sizes = [8, 1], strides = [1, 1]} : vector<8x3xf32> to vector<8x1xf32>
    %5 = vector.extract_strided_slice %3 {offsets = [0, 0], sizes = [1, 64], strides = [1, 1]} : vector<3x64xf32> to vector<1x64xf32>
    %6 = vector.broadcast %4 : vector<8x1xf32> to vector<8x64xf32>
    %7 = vector.broadcast %5 : vector<1x64xf32> to vector<8x64xf32>
    %8 = arith.subf %6, %7 : vector<8x64xf32>
    %9 = arith.mulf %8, %8 : vector<8x64xf32>
    %10 = vector.extract_strided_slice %1 {offsets = [0, 1], sizes = [8, 1], strides = [1, 1]} : vector<8x3xf32> to vector<8x1xf32>
    %11 = vector.extract_strided_slice %3 {offsets = [1, 0], sizes = [1, 64], strides = [1, 1]} : vector<3x64xf32> to vector<1x64xf32>
    %12 = vector.broadcast %10 : vector<8x1xf32> to vector<8x64xf32>
    %13 = vector.broadcast %11 : vector<1x64xf32> to vector<8x64xf32>
    %14 = arith.subf %12, %13 : vector<8x64xf32>
    %15 = arith.mulf %14, %14 : vector<8x64xf32>
    %16 = arith.addf %9, %15 : vector<8x64xf32>
    %17 = vector.extract_strided_slice %1 {offsets = [0, 2], sizes = [8, 1], strides = [1, 1]} : vector<8x3xf32> to vector<8x1xf32>
    %18 = vector.extract_strided_slice %3 {offsets = [2, 0], sizes = [1, 64], strides = [1, 1]} : vector<3x64xf32> to vector<1x64xf32>
    %19 = vector.broadcast %17 : vector<8x1xf32> to vector<8x64xf32>
    %20 = vector.broadcast %18 : vector<1x64xf32> to vector<8x64xf32>
    %21 = arith.subf %19, %20 : vector<8x64xf32>
    %22 = arith.mulf %21, %21 : vector<8x64xf32>
    %23 = arith.addf %16, %22 : vector<8x64xf32>
    %24 = tpu.iota {dimensions = array<i32: 1>} : vector<8x64xi32>
    %cst = arith.constant 9.000000e-02 : f32
    %25 = vector.broadcast %cst : f32 to vector<8x64xf32>
    %26 = arith.cmpf ole, %23, %25 : vector<8x64xf32>
    %c64_i32 = arith.constant 64 : i32
    %27 = vector.broadcast %c64_i32 : i32 to vector<8x64xi32>
    %28 = arith.select %26, %24, %27 : vector<8x64xi1>, vector<8x64xi32>
    %29 = tpu.iota {dimensions = array<i32: 1>} : vector<8x8xi32>
    %cst_5 = arith.constant dense<2147483647> : vector<8xi32>
    %30 = vector.multi_reduction <minsi>, %28, %cst_5 [1] : vector<8x64xi32> to vector<8xi32>
    %31 = vector.shape_cast %30 : vector<8xi32> to vector<8x1xi32>
    %c0_i32 = arith.constant 0 : i32
    %32 = vector.broadcast %c0_i32 : i32 to vector<8x8xi32>
    %33 = arith.cmpi eq, %29, %32 : vector<8x8xi32>
    %c0_i32_6 = arith.constant 0 : i32
    %34 = vector.shape_cast %31 : vector<8x1xi32> to vector<8x1xi32>
    %35 = vector.broadcast %34 : vector<8x1xi32> to vector<8x8xi32>
    %36 = vector.broadcast %c0_i32_6 : i32 to vector<8x8xi32>
    %37 = arith.select %33, %35, %36 : vector<8x8xi1>, vector<8x8xi32>
    %c1_i32 = arith.constant 1 : i32
    %38 = vector.broadcast %31 : vector<8x1xi32> to vector<8x64xi32>
    %39 = arith.cmpi sgt, %28, %38 : vector<8x64xi32>
    %c64_i32_7 = arith.constant 64 : i32
    %40 = vector.broadcast %c64_i32_7 : i32 to vector<8x64xi32>
    %41 = arith.select %39, %28, %40 : vector<8x64xi1>, vector<8x64xi32>
    %cst_8 = arith.constant dense<2147483647> : vector<8xi32>
    %42 = vector.multi_reduction <minsi>, %41, %cst_8 [1] : vector<8x64xi32> to vector<8xi32>
    %43 = vector.shape_cast %42 : vector<8xi32> to vector<8x1xi32>
    %c64_i32_9 = arith.constant 64 : i32
    %44 = vector.broadcast %c64_i32_9 : i32 to vector<8x1xi32>
    %45 = arith.cmpi eq, %43, %44 : vector<8x1xi32>
    %46 = arith.select %45, %31, %43 : vector<8x1xi1>, vector<8x1xi32>
    %47 = vector.broadcast %c1_i32 : i32 to vector<8x8xi32>
    %48 = arith.cmpi eq, %29, %47 : vector<8x8xi32>
    %49 = vector.shape_cast %46 : vector<8x1xi32> to vector<8x1xi32>
    %50 = vector.broadcast %49 : vector<8x1xi32> to vector<8x8xi32>
    %51 = arith.select %48, %50, %37 : vector<8x8xi1>, vector<8x8xi32>
    %c2_i32 = arith.constant 2 : i32
    %52 = vector.broadcast %43 : vector<8x1xi32> to vector<8x64xi32>
    %53 = arith.cmpi sgt, %28, %52 : vector<8x64xi32>
    %c64_i32_10 = arith.constant 64 : i32
    %54 = vector.broadcast %c64_i32_10 : i32 to vector<8x64xi32>
    %55 = arith.select %53, %28, %54 : vector<8x64xi1>, vector<8x64xi32>
    %cst_11 = arith.constant dense<2147483647> : vector<8xi32>
    %56 = vector.multi_reduction <minsi>, %55, %cst_11 [1] : vector<8x64xi32> to vector<8xi32>
    %57 = vector.shape_cast %56 : vector<8xi32> to vector<8x1xi32>
    %c64_i32_12 = arith.constant 64 : i32
    %58 = vector.broadcast %c64_i32_12 : i32 to vector<8x1xi32>
    %59 = arith.cmpi eq, %57, %58 : vector<8x1xi32>
    %60 = arith.select %59, %31, %57 : vector<8x1xi1>, vector<8x1xi32>
    %61 = vector.broadcast %c2_i32 : i32 to vector<8x8xi32>
    %62 = arith.cmpi eq, %29, %61 : vector<8x8xi32>
    %63 = vector.shape_cast %60 : vector<8x1xi32> to vector<8x1xi32>
    %64 = vector.broadcast %63 : vector<8x1xi32> to vector<8x8xi32>
    %65 = arith.select %62, %64, %51 : vector<8x8xi1>, vector<8x8xi32>
    %c3_i32 = arith.constant 3 : i32
    %66 = vector.broadcast %57 : vector<8x1xi32> to vector<8x64xi32>
    %67 = arith.cmpi sgt, %28, %66 : vector<8x64xi32>
    %c64_i32_13 = arith.constant 64 : i32
    %68 = vector.broadcast %c64_i32_13 : i32 to vector<8x64xi32>
    %69 = arith.select %67, %28, %68 : vector<8x64xi1>, vector<8x64xi32>
    %cst_14 = arith.constant dense<2147483647> : vector<8xi32>
    %70 = vector.multi_reduction <minsi>, %69, %cst_14 [1] : vector<8x64xi32> to vector<8xi32>
    %71 = vector.shape_cast %70 : vector<8xi32> to vector<8x1xi32>
    %c64_i32_15 = arith.constant 64 : i32
    %72 = vector.broadcast %c64_i32_15 : i32 to vector<8x1xi32>
    %73 = arith.cmpi eq, %71, %72 : vector<8x1xi32>
    %74 = arith.select %73, %31, %71 : vector<8x1xi1>, vector<8x1xi32>
    %75 = vector.broadcast %c3_i32 : i32 to vector<8x8xi32>
    %76 = arith.cmpi eq, %29, %75 : vector<8x8xi32>
    %77 = vector.shape_cast %74 : vector<8x1xi32> to vector<8x1xi32>
    %78 = vector.broadcast %77 : vector<8x1xi32> to vector<8x8xi32>
    %79 = arith.select %76, %78, %65 : vector<8x8xi1>, vector<8x8xi32>
    %c4_i32 = arith.constant 4 : i32
    %80 = vector.broadcast %71 : vector<8x1xi32> to vector<8x64xi32>
    %81 = arith.cmpi sgt, %28, %80 : vector<8x64xi32>
    %c64_i32_16 = arith.constant 64 : i32
    %82 = vector.broadcast %c64_i32_16 : i32 to vector<8x64xi32>
    %83 = arith.select %81, %28, %82 : vector<8x64xi1>, vector<8x64xi32>
    %cst_17 = arith.constant dense<2147483647> : vector<8xi32>
    %84 = vector.multi_reduction <minsi>, %83, %cst_17 [1] : vector<8x64xi32> to vector<8xi32>
    %85 = vector.shape_cast %84 : vector<8xi32> to vector<8x1xi32>
    %c64_i32_18 = arith.constant 64 : i32
    %86 = vector.broadcast %c64_i32_18 : i32 to vector<8x1xi32>
    %87 = arith.cmpi eq, %85, %86 : vector<8x1xi32>
    %88 = arith.select %87, %31, %85 : vector<8x1xi1>, vector<8x1xi32>
    %89 = vector.broadcast %c4_i32 : i32 to vector<8x8xi32>
    %90 = arith.cmpi eq, %29, %89 : vector<8x8xi32>
    %91 = vector.shape_cast %88 : vector<8x1xi32> to vector<8x1xi32>
    %92 = vector.broadcast %91 : vector<8x1xi32> to vector<8x8xi32>
    %93 = arith.select %90, %92, %79 : vector<8x8xi1>, vector<8x8xi32>
    %c5_i32 = arith.constant 5 : i32
    %94 = vector.broadcast %85 : vector<8x1xi32> to vector<8x64xi32>
    %95 = arith.cmpi sgt, %28, %94 : vector<8x64xi32>
    %c64_i32_19 = arith.constant 64 : i32
    %96 = vector.broadcast %c64_i32_19 : i32 to vector<8x64xi32>
    %97 = arith.select %95, %28, %96 : vector<8x64xi1>, vector<8x64xi32>
    %cst_20 = arith.constant dense<2147483647> : vector<8xi32>
    %98 = vector.multi_reduction <minsi>, %97, %cst_20 [1] : vector<8x64xi32> to vector<8xi32>
    %99 = vector.shape_cast %98 : vector<8xi32> to vector<8x1xi32>
    %c64_i32_21 = arith.constant 64 : i32
    %100 = vector.broadcast %c64_i32_21 : i32 to vector<8x1xi32>
    %101 = arith.cmpi eq, %99, %100 : vector<8x1xi32>
    %102 = arith.select %101, %31, %99 : vector<8x1xi1>, vector<8x1xi32>
    %103 = vector.broadcast %c5_i32 : i32 to vector<8x8xi32>
    %104 = arith.cmpi eq, %29, %103 : vector<8x8xi32>
    %105 = vector.shape_cast %102 : vector<8x1xi32> to vector<8x1xi32>
    %106 = vector.broadcast %105 : vector<8x1xi32> to vector<8x8xi32>
    %107 = arith.select %104, %106, %93 : vector<8x8xi1>, vector<8x8xi32>
    %c6_i32 = arith.constant 6 : i32
    %108 = vector.broadcast %99 : vector<8x1xi32> to vector<8x64xi32>
    %109 = arith.cmpi sgt, %28, %108 : vector<8x64xi32>
    %c64_i32_22 = arith.constant 64 : i32
    %110 = vector.broadcast %c64_i32_22 : i32 to vector<8x64xi32>
    %111 = arith.select %109, %28, %110 : vector<8x64xi1>, vector<8x64xi32>
    %cst_23 = arith.constant dense<2147483647> : vector<8xi32>
    %112 = vector.multi_reduction <minsi>, %111, %cst_23 [1] : vector<8x64xi32> to vector<8xi32>
    %113 = vector.shape_cast %112 : vector<8xi32> to vector<8x1xi32>
    %c64_i32_24 = arith.constant 64 : i32
    %114 = vector.broadcast %c64_i32_24 : i32 to vector<8x1xi32>
    %115 = arith.cmpi eq, %113, %114 : vector<8x1xi32>
    %116 = arith.select %115, %31, %113 : vector<8x1xi1>, vector<8x1xi32>
    %117 = vector.broadcast %c6_i32 : i32 to vector<8x8xi32>
    %118 = arith.cmpi eq, %29, %117 : vector<8x8xi32>
    %119 = vector.shape_cast %116 : vector<8x1xi32> to vector<8x1xi32>
    %120 = vector.broadcast %119 : vector<8x1xi32> to vector<8x8xi32>
    %121 = arith.select %118, %120, %107 : vector<8x8xi1>, vector<8x8xi32>
    %c7_i32 = arith.constant 7 : i32
    %122 = vector.broadcast %113 : vector<8x1xi32> to vector<8x64xi32>
    %123 = arith.cmpi sgt, %28, %122 : vector<8x64xi32>
    %c64_i32_25 = arith.constant 64 : i32
    %124 = vector.broadcast %c64_i32_25 : i32 to vector<8x64xi32>
    %125 = arith.select %123, %28, %124 : vector<8x64xi1>, vector<8x64xi32>
    %cst_26 = arith.constant dense<2147483647> : vector<8xi32>
    %126 = vector.multi_reduction <minsi>, %125, %cst_26 [1] : vector<8x64xi32> to vector<8xi32>
    %127 = vector.shape_cast %126 : vector<8xi32> to vector<8x1xi32>
    %c64_i32_27 = arith.constant 64 : i32
    %128 = vector.broadcast %c64_i32_27 : i32 to vector<8x1xi32>
    %129 = arith.cmpi eq, %127, %128 : vector<8x1xi32>
    %130 = arith.select %129, %31, %127 : vector<8x1xi1>, vector<8x1xi32>
    %131 = vector.broadcast %c7_i32 : i32 to vector<8x8xi32>
    %132 = arith.cmpi eq, %29, %131 : vector<8x8xi32>
    %133 = vector.shape_cast %130 : vector<8x1xi32> to vector<8x1xi32>
    %134 = vector.broadcast %133 : vector<8x1xi32> to vector<8x8xi32>
    %135 = arith.select %132, %134, %121 : vector<8x8xi1>, vector<8x8xi32>
    %c7_i32_28 = arith.constant 7 : i32
    %c0_29 = arith.constant 0 : index
    %c0_30 = arith.constant 0 : index
    %c0_31 = arith.constant 0 : index
    %136 = vector.load %arg4[%c0_29, %c0_30, %c0_31] : memref<1x8x8xi32, #tpu.memory_space<vmem>>, vector<1x8x8xi32>
    %137 = vector.shape_cast %136 : vector<1x8x8xi32> to vector<8x8xi32>
    %138 = vector.shape_cast %135 : vector<8x8xi32> to vector<1x8x8xi32>
    tpu.vector_store %arg4[%c0_29, %c0_30, %c0_31], %138 {strides = array<i32>} : memref<1x8x8xi32, #tpu.memory_space<vmem>>, vector<1x8x8xi32>,
    return
  }
  func.func @transform_0(%arg0: i32, %arg1: i32) -> (i32, i32, i32) {
    %c0_i32 = arith.constant 0 : i32
    %c0_i32_0 = arith.constant 0 : i32
    return %arg0, %arg1, %c0_i32 : i32, i32, i32
  }
  func.func @transform_1(%arg0: i32, %arg1: i32) -> (i32, i32, i32) {
    %c0_i32 = arith.constant 0 : i32
    %c0_i32_0 = arith.constant 0 : i32
    %c0_i32_1 = arith.constant 0 : i32
    return %arg0, %c0_i32, %c0_i32_0 : i32, i32, i32
  }
  func.func @transform_2(%arg0: i32, %arg1: i32) -> (i32, i32, i32) {
    %c0_i32 = arith.constant 0 : i32
    %c0_i32_0 = arith.constant 0 : i32
    return %arg0, %arg1, %c0_i32 : i32, i32, i32
  }
}

</mosaic_0001>

<bundles_post_ra>
// kernel: tpu_custom_call.1
= control target key start
LH: loop header
LB: loop body
LE: loop exit
PB: predicated region body
PF: predicated region fallthrough
CT: control target
= control target key end

     0   :  { %7 = vsyncpa [#allocation3], 0  ;;  %s820_s0 = inlined_call_operand.vmem [shape: f32[2,8,3], index: 0, kind: input, shape index: {}]   ;;  %s821_s1 = inlined_call_operand.vmem [shape: f32[2,3,64], index: 1, kind: input, shape index: {}]   ;;  %s822_s2 = inlined_call_operand.hbm [shape: s32[2,8,8], index: 2, kind: output, shape index: {}]  }
   0x1   :  { %9 = vsyncpa [#allocation3 + $0x1], 0  ;;  %s658_s9 = smov 0   ;;  %s660_s10 = smov 0  }
   0x2   :  { %s662_s11 = smov 0   ;;  %s664_s12 = smov 0  }
   0x3   :  { %s666_s13 = smov 0   ;;  %s668_s14 = smov 0  }
   0x4 LB: > { %s485_s15 = sadd.s32 4294967295, %s637_s14   ;;  %s486_s16 = sadd.s32 4294967294, %s637_s14   ;;  %s637_s14 = sphi %s668_s14, %s15_s14   ;;  %s633_s13 = sphi %s666_s13, %s829_s13   ;;  %s629_s12 = sphi %s664_s12, %s828_s12   ;;  %s625_s11 = sphi %s662_s11, %s827_s11   ;;  %s621_s10 = sphi %s660_s10, %s826_s10   ;;  %s617_s9 = sphi %s658_s9, %s825_s9  }
   0x5   : > { %s27_s17 = sadd.s32 1, %s633_s13  ;;  %s90_s18 = sadd.s32 1, %s625_s11 }
   0x6   : > { %p29_p0 = scmp.ge.s32.totalorder %s27_s17, 2  ;;  %p100_p1 = scmp.ne.s32.totalorder %s625_s11, %s621_s10 }
   0x7   : > { %p101_p2 = scmp.eq.s32.totalorder %s485_s15, 1  ;;  %p106_p3 = scmp.ne.s32.totalorder %s621_s10, %s617_s9 }
   0x8   : > { %s831_s17 = smov (%p29_p0, %s27_s17), 0  ;;  %p107_p5 = scmp.eq.s32.totalorder %s486_s16, 1 }
   0x9   : > { %p698_p4 = por %p101_p2, %p100_p1  ;;  %s85_s20 = ssub.s32 %s633_s13, %s831_s17 }
   0xa   : > { %p489_p6 = scmp.ge.s32.totalorder %s637_s14, 1  ;;  %p88_p7 = scmp.eq.s32.totalorder %s85_s20, 0 }
   0xb   : > { %p705_p8 = por %p107_p5, %p106_p3  ;;  %p142_p9 = scmp.lt.s32.totalorder %s637_s14, 3 }
   0xc   : > { %s711_s22 = scalar_select %p88_p7, %s625_s11, %s90_s18  }
   0xd   : > { %p143_p10 = pnand %p489_p6, %p142_p9 }
   0xe   : > { %p170_p11 = scmp.lt.s32.totalorder (!%p143_p10), %s629_s12, 1  ;;  %v639_v0 = vmov (!%p143_p10), 0   ;;  %v640_v1 = vmov (!%p143_p10), 2   ;;  %v641_v3 = vmov (!%p143_p10), 1   ;;  %v188_v4 = vlaneseq (!%p143_p10)  ;;  %s167_s4 = sand.u32 (!%p143_p10), 1, %s621_s10  }
   0xf   : > { %146 = sbr.rel (%p143_p10) target bundleno = 2561 (0xa01), region = 28  ;;  %555 = vset.pattern.permute.xlu0 (!%p143_p10), %v639_v0  ;;  %557 = vset.pattern.permute.xlu1 (!%p143_p10), %v640_v1  ;;  %vm220_vm0 = vcmask (!%p143_p10), 523264   ;;  %s490_s5 = sshll.u32 (!%p143_p10), %s167_s4, 3 }
  0x10   : > { %v189_v5 = vshrl.u32 (!%p143_p10), %v188_v4, 7  ;;  %v721_v23 = vand.u32 (!%p143_p10), 127, %v188_v4  ;;  %s494_s6 = sshll.u32 (!%p143_p10), %s629_s12, 7  ;;  %s169_s7 = scalar_lea.vmem (!%p143_p10), [#allocation2], %s490_s5 }
  0x11   : > { %s402_s8 = sshll.u32 (!%p143_p10), %s169_s7, 4  ;;  %s773_s18 = scalar_lea.hbm (!%p143_p10), %s822_s2, %s494_s6  ;;  %s775_s8 = int_to_ptr.vmem [resolvable:$true] %s402_s8 }
  0x12   : > { %v190_v6 = vsub.s32 (!%p143_p10), 0, %v189_v5  ;;  %v211_v7 = vsub.s32 (!%p143_p10), 2, %v189_v5  ;;  %v200_v9 = vsub.s32 (!%p143_p10), 1, %v189_v5  ;;  %vm236_vm8 = vcmp.eq.s32.totalorder (!%p143_p10), %v721_v23, 0  ;;  %s559_s20 = scalar_lea.vmem (!%p143_p10), %s775_s8, 128 }
  0x13   : > { %vm257_vm9 = vcmp.eq.s32.totalorder (!%p143_p10), %v721_v23, 1  ;;  %vm278_vm10 = vcmp.eq.s32.totalorder (!%p143_p10), %v721_v23, 2  ;;  %vm299_vm14 = vcmp.eq.s32.totalorder (!%p143_p10), %v721_v23, 3  ;;  %p560_p12 = scmp.ne.s32.totalorder (!%p143_p10), %s775_s8, %s559_s20 }
  0x15   : > { %p561_p13 = pnand (!%p143_p10), %p560_p12, %p698_p4 }
  0x16   : > { %s171_s23 = scalar_select %p170_p11, %s629_s12, 1 }
  0x17   : > { %s388_s12 = scalar_lea.sflag [#allocation3], %s167_s4  ;;  %p562_p0 = pneg %p561_p13 }
  0x18   : > { %s491_s24 = sshll.u32 %s171_s23, 3  ;;  %s492_s28 = sshll.u32 %s171_s23, 2 }
  0x19   : > { %s176_s27 = scalar_lea.vmem %s820_s0, %s491_s24  ;;  %s180_s3 = scalar_lea.vmem %s821_s1, %s492_s28 }
  0x1a   : > { %v181_v2 = vld [vmem:[%s176_s27] sm:$0xff]  ;;  %s642_s23 = smov [#allocation2]  }
  0x1b   : > { %185 = vperm.xlu0 %555, %v181_v2   ;;  %206 = vperm.xlu1 %557, %v181_v2   ;;  %v182_v8 = vld [vmem:[%s180_s3] sm:$0x7]  ;;  %s563_s24 = sshll.u32 %s642_s23, 4  ;;  %s564_s24 = int_to_ptr.vmem [resolvable:$false] %s563_s24 }
  0x1c   : > { %v191_v10 = vrot.slane %v182_v8, %v190_v6  ;;  %v212_v12 = vrot.slane %v182_v8, %v211_v7  ;;  %v201_v14 = vrot.slane %v182_v8, %v200_v9  ;;  %s565_s25 = scalar_lea.vmem %s564_s24, 256  ;;  %p566_p1 = scmp.lt.s32.totalorder %s775_s8, %s564_s24 }
  0x1d   : > { %p567_p2 = scmp.lt.s32.totalorder %s565_s25, %s559_s20 }
  0x1f   : > { %556 = vset.pattern.permute.xlu0 %v641_v3  ;;  %p568_p3 = por %p567_p2, %p566_p1 }
  0x20   : > { %195 = vperm.xlu0 %556, %v181_v2  }
  0x21   : > { %p569_p5 = pnand %p568_p3, %p562_p0 }
  0x24   : > { %558 = vset.pattern.permute.xlu0 %v640_v1 }
  0x9a   : > { %v186_v11 = vpop.permute.xlu0 %185  ;;  %v207_v13 = vpop.permute.xlu1 %206 }
  0x9b   : > { %v192_v15 = vsub.f32 %v186_v11, %v191_v10  ;;  %v213_v16 = vsub.f32 %v207_v13, %v212_v12 }
  0x9d   : > { %v193_v19 = vmul.f32 %v192_v15, %v192_v15  ;;  %v214_v21 = vmul.f32 %v213_v16, %v213_v16 }
  0x9f   : > { %v196_v17 = vpop.permute.xlu0 %195 }
  0xa0   : > { %v202_v18 = vsub.f32 %v196_v17, %v201_v14 }
  0xa2   : > { %v203_v20 = vmul.f32 %v202_v18, %v202_v18 }
  0xa4   : > { %v204_v22 = vadd.f32 %v203_v20, %v193_v19 }
  0xa6   : > { %v215_v24 = vadd.f32 %v214_v21, %v204_v22 }
  0xa8   : > { %vm218_vm1 = vcmp.le.f32.partialorder %v215_v24, 0.09 }
  0xa9   : > { %v724_v25 = vsel %vm218_vm1, %v721_v23, 64 }
  0xaa   : > { %v221_v26 = vsel %vm220_vm0, %v724_v25, 2147483647 }
  0xab   : > { %v223_v27 = vshra.s32 %v221_v26, 16  ;;  %v222_v29 = vand.u32 65535, %v221_v26 }
  0xad   : > { %v225_v28 = vcvt.s32.f32 %v223_v27  ;;  %v224_v31 = vcvt.s32.f32 %v222_v29 }
  0xaf   : > { %226 = vmin.xlane.f32.xlu1 %v225_v28 }
 0x13c   : > { %v227_v30 = vpop.xlane.xlu1 %226 }
 0x13d   : > { %vm228_vm2 = vcmp.eq.f32.partialorder %v225_v28, %v227_v30  ;;  %v233_v33 = vcvt.f32.s32 %v227_v30 }
 0x13e   : > { %v229_v32 = vsel %vm228_vm2, %v224_v31, inf }
 0x13f   : > { %230 = vmin.xlane.f32.xlu0 %v229_v32  ;;  %v234_v35 = vshll.u32 %v233_v33, 16 }
 0x1cc   : > { %v231_v34 = vpop.xlane.xlu0 %230 }
 0x1cd   : > { %v232_v36 = vcvt.f32.s32 %v231_v34 }
 0x1cf   : > { %v728_v37 = vadd.s32 %v234_v35, %v232_v36 }
 0x1d1   : > { %vm238_vm3 = vcmp.gt.s32.totalorder %v724_v25, %v728_v37  ;;  %v237_v1 = vsel %vm236_vm8, %v728_v37, 0 }
 0x1d2   : > { %v239_v38 = vsel %vm238_vm3, %v724_v25, 64  ;;  %vm320_vm3 = vcmp.eq.s32.totalorder %v721_v23, 4 }
 0x1d3   : > { %v240_v39 = vsel %vm220_vm0, %v239_v38, 2147483647 }
 0x1d4   : > { %v242_v40 = vshra.s32 %v240_v39, 16  ;;  %v241_v42 = vand.u32 65535, %v240_v39 }
 0x1d6   : > { %v244_v41 = vcvt.s32.f32 %v242_v40  ;;  %v243_v44 = vcvt.s32.f32 %v241_v42 }
 0x1d8   : > { %245 = vmin.xlane.f32.xlu1 %v244_v41 }
 0x265   : > { %v246_v43 = vpop.xlane.xlu1 %245 }
 0x266   : > { %vm247_vm4 = vcmp.eq.f32.partialorder %v244_v41, %v246_v43  ;;  %v252_v46 = vcvt.f32.s32 %v246_v43 }
 0x267   : > { %v248_v45 = vsel %vm247_vm4, %v243_v44, inf }
 0x268   : > { %249 = vmin.xlane.f32.xlu0 %v248_v45  ;;  %v253_v48 = vshll.u32 %v252_v46, 16 }
 0x2f5   : > { %v250_v47 = vpop.xlane.xlu0 %249 }
 0x2f6   : > { %v251_v49 = vcvt.f32.s32 %v250_v47 }
 0x2f8   : > { %v254_v50 = vadd.s32 %v253_v48, %v251_v49 }
 0x2fa   : > { %vm259_vm5 = vcmp.gt.s32.totalorder %v724_v25, %v254_v50  ;;  %vm255_vm7 = vcmp.eq.s32.totalorder %v254_v50, 64 }
 0x2fb   : > { %v260_v51 = vsel %vm259_vm5, %v724_v25, 64  ;;  %v256_v63 = vsel %vm255_vm7, %v728_v37, %v254_v50  ;;  %vm341_vm7 = vcmp.eq.s32.totalorder %v721_v23, 5 }
 0x2fc   : > { %v261_v52 = vsel %vm220_vm0, %v260_v51, 2147483647  ;;  %v258_v2 = vsel %vm257_vm9, %v256_v63, %v237_v1 }
 0x2fd   : > { %v263_v53 = vshra.s32 %v261_v52, 16  ;;  %v262_v55 = vand.u32 65535, %v261_v52 }
 0x2ff   : > { %v265_v54 = vcvt.s32.f32 %v263_v53  ;;  %v264_v57 = vcvt.s32.f32 %v262_v55 }
 0x301   : > { %266 = vmin.xlane.f32.xlu1 %v265_v54 }
 0x38e   : > { %v267_v56 = vpop.xlane.xlu1 %266 }
 0x38f   : > { %vm268_vm6 = vcmp.eq.f32.partialorder %v265_v54, %v267_v56  ;;  %v273_v59 = vcvt.f32.s32 %v267_v56 }
 0x390   : > { %v269_v58 = vsel %vm268_vm6, %v264_v57, inf }
 0x391   : > { %270 = vmin.xlane.f32.xlu0 %v269_v58  ;;  %v274_v61 = vshll.u32 %v273_v59, 16 }
 0x41e   : > { %v271_v60 = vpop.xlane.xlu0 %270 }
 0x41f   : > { %v272_v62 = vcvt.f32.s32 %v271_v60 }
 0x421   : > { %v275_v0 = vadd.s32 %v274_v61, %v272_v62 }
 0x423   : > { %vm276_vm11 = vcmp.eq.s32.totalorder %v275_v0, 64  ;;  %vm280_vm12 = vcmp.gt.s32.totalorder %v724_v25, %v275_v0 }
 0x424   : > { %v277_v3 = vsel %vm276_vm11, %v728_v37, %v275_v0  ;;  %v281_v4 = vsel %vm280_vm12, %v724_v25, 64  ;;  %vm362_vm11 = vcmp.eq.s32.totalorder %v721_v23, 6 }
 0x425   : > { %v279_v5 = vsel %vm278_vm10, %v277_v3, %v258_v2  ;;  %v282_v6 = vsel %vm220_vm0, %v281_v4, 2147483647 }
 0x426   : > { %v284_v7 = vshra.s32 %v282_v6, 16  ;;  %v283_v9 = vand.u32 65535, %v282_v6 }
 0x428   : > { %v286_v8 = vcvt.s32.f32 %v284_v7  ;;  %v285_v11 = vcvt.s32.f32 %v283_v9 }
 0x42a   : > { %287 = vmin.xlane.f32.xlu1 %v286_v8 }
 0x4b7   : > { %v288_v10 = vpop.xlane.xlu1 %287 }
 0x4b8   : > { %vm289_vm13 = vcmp.eq.f32.partialorder %v286_v8, %v288_v10  ;;  %v294_v13 = vcvt.f32.s32 %v288_v10 }
 0x4b9   : > { %v290_v12 = vsel %vm289_vm13, %v285_v11, inf }
 0x4ba   : > { %291 = vmin.xlane.f32.xlu0 %v290_v12  ;;  %v295_v15 = vshll.u32 %v294_v13, 16 }
 0x547   : > { %v292_v14 = vpop.xlane.xlu0 %291 }
 0x548   : > { %v293_v16 = vcvt.f32.s32 %v292_v14 }
 0x54a   : > { %v296_v17 = vadd.s32 %v295_v15, %v293_v16 }
 0x54c   : > { %vm297_vm15 = vcmp.eq.s32.totalorder %v296_v17, 64  ;;  %vm301_vm1 = vcmp.gt.s32.totalorder %v724_v25, %v296_v17 }
 0x54d   : > { %v298_v18 = vsel %vm297_vm15, %v728_v37, %v296_v17  ;;  %v302_v19 = vsel %vm301_vm1, %v724_v25, 64  ;;  %vm385_vm1 = vcmask 64512  }
 0x54e   : > { %v300_v20 = vsel %vm299_vm14, %v298_v18, %v279_v5  ;;  %v303_v21 = vsel %vm220_vm0, %v302_v19, 2147483647 }
 0x54f   : > { %v305_v22 = vshra.s32 %v303_v21, 16  ;;  %v304_v26 = vand.u32 65535, %v303_v21 }
 0x551   : > { %v307_v24 = vcvt.s32.f32 %v305_v22  ;;  %v306_v28 = vcvt.s32.f32 %v304_v26 }
 0x553   : > { %308 = vmin.xlane.f32.xlu1 %v307_v24 }
 0x5e0   : > { %v309_v27 = vpop.xlane.xlu1 %308 }
 0x5e1   : > { %vm310_vm2 = vcmp.eq.f32.partialorder %v307_v24, %v309_v27  ;;  %v315_v30 = vcvt.f32.s32 %v309_v27 }
 0x5e2   : > { %v311_v29 = vsel %vm310_vm2, %v306_v28, inf }
 0x5e3   : > { %312 = vmin.xlane.f32.xlu0 %v311_v29  ;;  %v316_v32 = vshll.u32 %v315_v30, 16 }
 0x670   : > { %v313_v31 = vpop.xlane.xlu0 %312 }
 0x671   : > { %v314_v33 = vcvt.f32.s32 %v313_v31 }
 0x673   : > { %v317_v34 = vadd.s32 %v316_v32, %v314_v33 }
 0x675   : > { %vm318_vm4 = vcmp.eq.s32.totalorder %v317_v34, 64  ;;  %vm322_vm5 = vcmp.gt.s32.totalorder %v724_v25, %v317_v34 }
 0x676   : > { %v319_v35 = vsel %vm318_vm4, %v728_v37, %v317_v34  ;;  %v323_v36 = vsel %vm322_vm5, %v724_v25, 64 }
 0x677   : > { %v321_v38 = vsel %vm320_vm3, %v319_v35, %v300_v20  ;;  %v324_v39 = vsel %vm220_vm0, %v323_v36, 2147483647 }
 0x678   : > { %v326_v40 = vshra.s32 %v324_v39, 16  ;;  %v325_v42 = vand.u32 65535, %v324_v39 }
 0x67a   : > { %v328_v41 = vcvt.s32.f32 %v326_v40  ;;  %v327_v44 = vcvt.s32.f32 %v325_v42 }
 0x67c   : > { %329 = vmin.xlane.f32.xlu1 %v328_v41 }
 0x709   : > { %v330_v43 = vpop.xlane.xlu1 %329 }
 0x70a   : > { %vm331_vm6 = vcmp.eq.f32.partialorder %v328_v41, %v330_v43  ;;  %v336_v46 = vcvt.f32.s32 %v330_v43 }
 0x70b   : > { %v332_v45 = vsel %vm331_vm6, %v327_v44, inf }
 0x70c   : > { %333 = vmin.xlane.f32.xlu0 %v332_v45  ;;  %v337_v48 = vshll.u32 %v336_v46, 16 }
 0x799   : > { %v334_v47 = vpop.xlane.xlu0 %333 }
 0x79a   : > { %v335_v49 = vcvt.f32.s32 %v334_v47 }
 0x79c   : > { %v338_v50 = vadd.s32 %v337_v48, %v335_v49 }
 0x79e   : > { %vm339_vm8 = vcmp.eq.s32.totalorder %v338_v50, 64  ;;  %vm343_vm9 = vcmp.gt.s32.totalorder %v724_v25, %v338_v50 }
 0x79f   : > { %v340_v51 = vsel %vm339_vm8, %v728_v37, %v338_v50  ;;  %v344_v52 = vsel %vm343_vm9, %v724_v25, 64 }
 0x7a0   : > { %v342_v53 = vsel %vm341_vm7, %v340_v51, %v321_v38  ;;  %v345_v54 = vsel %vm220_vm0, %v344_v52, 2147483647 }
 0x7a1   : > { %v347_v55 = vshra.s32 %v345_v54, 16  ;;  %v346_v57 = vand.u32 65535, %v345_v54 }
 0x7a3   : > { %v349_v56 = vcvt.s32.f32 %v347_v55  ;;  %v348_v59 = vcvt.s32.f32 %v346_v57 }
 0x7a5   : > { %350 = vmin.xlane.f32.xlu1 %v349_v56 }
 0x832   : > { %v351_v58 = vpop.xlane.xlu1 %350 }
 0x833   : > { %vm352_vm10 = vcmp.eq.f32.partialorder %v349_v56, %v351_v58  ;;  %v357_v61 = vcvt.f32.s32 %v351_v58 }
 0x834   : > { %v353_v60 = vsel %vm352_vm10, %v348_v59, inf }
 0x835   : > { %354 = vmin.xlane.f32.xlu0 %v353_v60  ;;  %v358_v63 = vshll.u32 %v357_v61, 16 }
 0x8c2   : > { %v355_v62 = vpop.xlane.xlu0 %354 }
 0x8c3   : > { %v356_v0 = vcvt.f32.s32 %v355_v62 }
 0x8c5   : > { %v359_v1 = vadd.s32 %v358_v63, %v356_v0 }
 0x8c7   : > { %vm360_vm12 = vcmp.eq.s32.totalorder %v359_v1, 64  ;;  %vm364_vm13 = vcmp.gt.s32.totalorder %v724_v25, %v359_v1 }
 0x8c8   : > { %v361_v2 = vsel %vm360_vm12, %v728_v37, %v359_v1  ;;  %v365_v3 = vsel %vm364_vm13, %v724_v25, 64 }
 0x8c9   : > { %v366_v4 = vsel %vm220_vm0, %v365_v3, 2147483647  ;;  %v363_v5 = vsel %vm362_vm11, %v361_v2, %v342_v53  ;;  %vm383_vm0 = vcmp.eq.s32.totalorder %v721_v23, 7 }
 0x8ca   : > { %v368_v6 = vshra.s32 %v366_v4, 16  ;;  %v367_v8 = vand.u32 65535, %v366_v4 }
 0x8cc   : > { %v370_v7 = vcvt.s32.f32 %v368_v6  ;;  %v369_v10 = vcvt.s32.f32 %v367_v8 }
 0x8ce   : > { %371 = vmin.xlane.f32.xlu1 %v370_v7 }
 0x95b   : > { %v372_v9 = vpop.xlane.xlu1 %371 }
 0x95c   : > { %vm373_vm14 = vcmp.eq.f32.partialorder %v370_v7, %v372_v9  ;;  %v378_v12 = vcvt.f32.s32 %v372_v9 }
 0x95d   : > { %v374_v11 = vsel %vm373_vm14, %v369_v10, inf }
 0x95e   : > { %375 = vmin.xlane.f32.xlu0 %v374_v11  ;;  %v379_v14 = vshll.u32 %v378_v12, 16 }
 0x9eb   : > { %v376_v13 = vpop.xlane.xlu0 %375 }
 0x9ec   : > { %v377_v15 = vcvt.f32.s32 %v376_v13 }
 0x9ee   : > { %v380_v25 = vadd.s32 %v379_v14, %v377_v15 }
 0x9f0   : > { %vm381_vm15 = vcmp.eq.s32.totalorder %v380_v25, 64 }
 0x9f1   : > { %v382_v16 = vsel %vm381_vm15, %v728_v37, %v380_v25 }
 0x9f2   : > { %v384_v17 = vsel %vm383_vm0, %v382_v16, %v363_v5 }
 0x9f3   : > { %386 = vst.msk [vmem:[%s169_s7] sm:$0xff] %vm385_vm1, %v384_v17 }
 0x9f4   : > { %572 = shalt.err (!%p569_p5)
}
 0x9f5   : > { %s573_s26 = scalar_lea.hbm %s773_s18, 128  ;;  %s577_s29 = scalar_lea.hbm %s822_s2, 256 }
 0x9f6   : > { %p574_p6 = scmp.ne.s32.totalorder %s773_s18, %s573_s26  ;;  %p578_p10 = scmp.lt.u32.totalorder %s773_s18, %s822_s2 }
 0x9f7   : > { %p579_p11 = scmp.lt.u32.totalorder %s577_s29, %s573_s26  ;;  %p581_p13 = scmp.lt.u32.totalorder %s573_s26, %s773_s18 }
 0x9f8   : > { %p575_p7 = pnand %p574_p6, %p698_p4 }
 0x9f9   : > { %p580_p12 = por %p579_p11, %p578_p10 }
 0x9fa   : > { %p576_p9 = pneg %p575_p7 }
 0x9fb   : > { %p582_p0 = por %p581_p13, %p580_p12 }
 0x9fd   : > { %p583_p1 = pnand %p582_p0, %p576_p9 }
 0x9ff   : > { %586 = shalt.err (!%p583_p1)
}
 0xa00   : > { %497 = dma.vmem_to_hbm [thread:$0]  (%p698_p4), %s775_s8, 128, %s773_s18, %s388_s12  }
 0xa01 PF: > { %p503_p2 = scmp.ge.s32.totalorder %s637_s14, 2  ;;  %s414_s4 = sand.u32 1, %s617_s9  }
 0xa02   : > { %s415_s5 = scalar_lea.sflag [#allocation3], %s414_s4 }
 0xa03   : > { %p500_p3 = pnand %p503_p2, %p705_p8 }
 0xa05   : > { %612 = dma.done.wait (!%p500_p3), %s415_s5, 128  }
 0xa06   : > { %614 = vsyncadd (!%p500_p3), %s415_s5, 4294967168  ;;  %s15_s14 = sadd.s32 1, %s637_s14   ;;  %s825_s9 = smov %s621_s10 }
 0xa07   : > { %p12_p5 = scmp.ge.s32.totalorder %s15_s14, 4   ;;  %s826_s10 = smov %s625_s11 }
 0xa08   : > { %s827_s11 = smov %s711_s22  ;;  %s828_s12 = smov %s633_s13 }
 0xa09   : > { %s829_s13 = smov %s831_s17  ;;  %14 = sbr.rel (!%p12_p5) target bundleno = 4 (0x4), region = 66 }
 0xa10   :  { %420 = vsyncpa [#allocation3], 1 }
 0xa11   :  { %422 = vsyncpa [#allocation3 + $0x1], 1 }

</bundles_post_ra>
